<compile_context>
chip_gen: v5e
topology: v5e:2x2
jax: 0.10.0
libtpu: 0.0.40
codegen_flags: <defaults>
</compile_context>

<pallas_src>
import math

import jax
import jax.numpy as jnp
from jax.experimental import pallas as pl
from jax.experimental.pallas import tpu as pltpu


def _round_up(x: int, m: int) -> int:
    return ((x + m - 1) // m) * m


# ----------------------------- kernels ------------------------------------- #

def _matmul_bias_kernel_single_k(x_ref, w_ref, b_ref, o_ref):
    # Whole reduction dim resident: one MXU pass, bias add, downcast store.
    o_ref[...] = (
        jnp.dot(x_ref[...], w_ref[...], preferred_element_type=jnp.float32)
        + b_ref[...]
    ).astype(o_ref.dtype)


def _matmul_bias_kernel_acc(x_ref, w_ref, b_ref, o_ref, acc_ref):
    # grid = (m_tiles, n_tiles, k_tiles); K (reduction over D_in) trailing.
    k = pl.program_id(2)

    @pl.when(k == 0)
    def _():
        acc_ref[...] = jnp.zeros_like(acc_ref)

    acc_ref[...] += jnp.dot(
        x_ref[...], w_ref[...], preferred_element_type=jnp.float32
    )

    @pl.when(k == pl.num_programs(2) - 1)
    def _():
        # Bias added exactly once, in the finalize step.
        o_ref[...] = (acc_ref[...] + b_ref[...]).astype(o_ref.dtype)


# ----------------------------- tiling -------------------------------------- #

def _shrink(v: int, floor: int, mult: int) -> int:
    """Halve v (rounded up to a multiple of `mult`), never below `floor`."""
    if v <= floor:
        return floor
    return max(floor, _round_up(v // 2, mult))


def _pick_tiles(m0, d_in_p, d_out_p, itemsize, vmem_budget_bytes):
    """Choose (TM, TN, TK) so double-buffered blocks + scratch fit the budget."""
    tm = min(512, m0)           # multiple of 8
    tn = min(512, d_out_p)      # multiple of 128
    tk = min(512, d_in_p)       # multiple of 128
    while True:
        need = (
            2 * tm * tk * itemsize      # x block (double-buffered)
            + 2 * tk * tn * itemsize    # weight block
            + 2 * tm * tn * itemsize    # output block
            + tm * tn * 4               # f32 accumulator scratch
            + 2 * tn * itemsize         # bias block
        )
        if need <= vmem_budget_bytes or (tm <= 8 and tn <= 128 and tk <= 128):
            return tm, tn, tk
        # Shrink K first (cheapest: more reduction steps), then rows, then N
        # (keep the output store as lane-dense as possible).
        if tk > 128:
            tk = _shrink(tk, 128, 128)
        elif tm > 8:
            tm = _shrink(tm, 8, 8)
        else:
            tn = _shrink(tn, 128, 128)


# ----------------------------- driver --------------------------------------- #

def _dense_2d(x_flat, weight, bias):
    """x_flat: (N, D_in), weight: (D_in, D_out), bias: (D_out,) -> (N, D_out)."""
    n_rows, d_in = x_flat.shape
    d_in_w, d_out = weight.shape
    assert d_in == d_in_w, (d_in, d_in_w)

    itemsize = jnp.dtype(x_flat.dtype).itemsize

    # Preliminary lane-dense padding targets for tile picking.
    d_in_p0 = _round_up(d_in, 128)
    d_out_p0 = _round_up(d_out, 128)
    m0 = _round_up(n_rows, 8)

    # Conservative budget: fits v5e's 16 MiB scoped default and v7x's 64 MiB VMEM.
    vmem_budget = 14 * 1024 * 1024
    tm, tn, tk = _pick_tiles(m0, d_in_p0, d_out_p0, itemsize, vmem_budget)

    # Final padded extents must be exact multiples of the chosen tiles.
    m_p = _round_up(n_rows, tm)
    k_p = _round_up(d_in, tk)
    n_p = _round_up(d_out, tn)

    x_p = x_flat
    if (m_p, k_p) != (n_rows, d_in):
        x_p = jnp.pad(x_flat, ((0, m_p - n_rows), (0, k_p - d_in)))
    w_p = weight
    if (k_p, n_p) != (d_in, d_out):
        w_p = jnp.pad(weight, ((0, k_p - d_in), (0, n_p - d_out)))
    b_p = bias if n_p == d_out else jnp.pad(bias, (0, n_p - d_out))
    b2d = b_p.reshape(1, n_p)

    grid_m, grid_n, grid_k = m_p // tm, n_p // tn, k_p // tk
    out_shape = jax.ShapeDtypeStruct((m_p, n_p), x_flat.dtype)

    if grid_k == 1:
        # Fast path: whole reduction in one block, no accumulator / pl.when.
        y_p = pl.pallas_call(
            _matmul_bias_kernel_single_k,
            out_shape=out_shape,
            grid_spec=pltpu.PrefetchScalarGridSpec(
                num_scalar_prefetch=0,
                grid=(grid_m, grid_n),
                in_specs=[
                    pl.BlockSpec((tm, k_p), lambda i, j: (i, 0)),
                    pl.BlockSpec((k_p, tn), lambda i, j: (0, j)),
                    pl.BlockSpec((1, tn), lambda i, j: (0, j)),
                ],
                out_specs=pl.BlockSpec((tm, tn), lambda i, j: (i, j)),
            ),
            compiler_params=pltpu.CompilerParams(
                dimension_semantics=("parallel", "parallel"),
                vmem_limit_bytes=32 * 1024 * 1024,
            ),
        )(x_p, w_p, b2d)
    else:
        y_p = pl.pallas_call(
            _matmul_bias_kernel_acc,
            out_shape=out_shape,
            grid_spec=pltpu.PrefetchScalarGridSpec(
                num_scalar_prefetch=0,
                grid=(grid_m, grid_n, grid_k),
                in_specs=[
                    pl.BlockSpec((tm, tk), lambda i, j, k: (i, k)),
                    pl.BlockSpec((tk, tn), lambda i, j, k: (k, j)),
                    pl.BlockSpec((1, tn), lambda i, j, k: (0, j)),
                ],
                out_specs=pl.BlockSpec((tm, tn), lambda i, j, k: (i, j)),
                scratch_shapes=[pltpu.VMEM((tm, tn), jnp.float32)],
            ),
            compiler_params=pltpu.CompilerParams(
                # Row / N tiles independent -> parallel (megacore); K reduction.
                dimension_semantics=("parallel", "parallel", "arbitrary"),
                vmem_limit_bytes=32 * 1024 * 1024,
            ),
        )(x_p, w_p, b2d)

    if (m_p, n_p) != (n_rows, d_out):
        y_p = y_p[:n_rows, :d_out]
    return y_p


def time_distributed_dense(x, weight, bias):
    """Apply Linear(D_in -> D_out) over the last axis of x (TimeDistributed, batch_first=False).

    x:      (..., D_in)
    weight: (D_in, D_out)   (transposed vs PyTorch's (out, in) storage)
    bias:   (D_out,)
    """
    d_in, d_out = weight.shape

    if x.ndim <= 2:
        x_flat = x.reshape(-1, d_in)
        y = _dense_2d(x_flat, weight, bias)
        return y.reshape(d_out) if x.ndim == 1 else y

    # TimeDistributed: flatten all leading dims, apply linear, restore per
    # PyTorch's batch_first=False path: y.view(-1, x.size(1), y.size(-1)).
    x_flat = x.reshape(-1, d_in)
    y_flat = _dense_2d(x_flat, weight, bias)
    return y_flat.reshape(-1, x.shape[1], d_out)


def init_linear_params(key, input_size, output_size, dtype=jnp.float32):
    """Deterministic init mimicking nn.Linear default (uniform(-1/sqrt(in), 1/sqrt(in)))."""
    kw, kb = jax.random.split(key)
    bound = 1.0 / math.sqrt(input_size)
    weight = jax.random.uniform(kw, (input_size, output_size), dtype=dtype,
                                minval=-bound, maxval=bound)
    bias = jax.random.uniform(kb, (output_size,), dtype=dtype,
                              minval=-bound, maxval=bound)
    return weight, bias


if __name__ == "__main__":
    INPUT_SIZE = 32
    OUTPUT_SIZE = 32
    B, T = 2, 8

    key = jax.random.PRNGKey(0)
    kx, kp = jax.random.split(key)

    x = jax.random.normal(kx, (B, T, INPUT_SIZE), dtype=jnp.float32)
    weight, bias = init_linear_params(kp, INPUT_SIZE, OUTPUT_SIZE)

    y = time_distributed_dense(x, weight, bias)
    y = jax.block_until_ready(y)

    # Reference check (plain JAX): nn.Linear applied over the last dim.
    y_ref = (x.reshape(-1, INPUT_SIZE) @ weight + bias).reshape(-1, T, OUTPUT_SIZE)
    assert y.shape == (B, T, OUTPUT_SIZE), y.shape
    assert jnp.allclose(y, y_ref, atol=1e-5, rtol=1e-5)

    # Also exercise the 2-D passthrough path of TimeDistributed.
    x2d = x[:, 0, :]
    y2d = jax.block_until_ready(time_distributed_dense(x2d, weight, bias))
    assert jnp.allclose(y2d, x2d @ weight + bias, atol=1e-5, rtol=1e-5)

    # Exercise the K-reduction (accumulator) path with a larger deterministic layer.
    kx2, kp2 = jax.random.split(jax.random.PRNGKey(0), 2)
    D_IN2, D_OUT2, T2 = 1152, 256, 8   # K padded to 1152 > max TK -> multi-step reduction
    xb = jax.random.normal(kx2, (2, T2, D_IN2), dtype=jnp.float32)
    wb, bb = init_linear_params(kp2, D_IN2, D_OUT2)
    yb = jax.block_until_ready(time_distributed_dense(xb, wb, bb))
    yb_ref = (xb.reshape(-1, D_IN2) @ wb + bb).reshape(-1, T2, D_OUT2)
    assert jnp.allclose(yb, yb_ref, atol=1e-4, rtol=1e-4)

    print("KERNEL_OK")
</pallas_src>

<mosaic_0001>
module attributes {stable_mosaic.version = 11 : i64} {
  func.func @_matmul_bias_kernel_single_k(%arg0: i32, %arg1: i32, %arg2: memref<16x128xf32, #tpu.memory_space<vmem>>, %arg3: memref<128x128xf32, #tpu.memory_space<vmem>>, %arg4: memref<1x128xf32, #tpu.memory_space<vmem>>, %arg5: memref<16x128xf32, #tpu.memory_space<vmem>>) attributes {dimension_semantics = [#tpu.dimension_semantics<parallel>, #tpu.dimension_semantics<parallel>], iteration_bounds = array<i64: 1, 1>, scalar_prefetch = 0 : i64, scratch_operands = 0 : i64, tpu.core_type = #tpu.core_type<tc>, window_params = [{transform_indices = @transform_0, window_bounds = array<i64: 16, 128>}, {transform_indices = @transform_1, window_bounds = array<i64: 128, 128>}, {transform_indices = @transform_2, window_bounds = array<i64: 1, 128>}, {transform_indices = @transform_3, window_bounds = array<i64: 16, 128>}]} {
    %c0 = arith.constant 0 : index
    %c0_0 = arith.constant 0 : index
    %0 = vector.load %arg2[%c0, %c0_0] : memref<16x128xf32, #tpu.memory_space<vmem>>, vector<16x128xf32>
    %c0_1 = arith.constant 0 : index
    %c0_2 = arith.constant 0 : index
    %1 = vector.load %arg3[%c0_1, %c0_2] : memref<128x128xf32, #tpu.memory_space<vmem>>, vector<128x128xf32>
    %cst = arith.constant dense<0.000000e+00> : vector<16x128xf32>
    %2 = tpu.matmul %0, %1, %cst {dimension_numbers = #tpu.dot_dimension_numbers<[1], [0], [0], [1], [0, 0, 1, 1], [], []>} : vector<16x128xf32>, vector<128x128xf32>, vector<16x128xf32> -> vector<16x128xf32>
    %c0_3 = arith.constant 0 : index
    %c0_4 = arith.constant 0 : index
    %3 = vector.load %arg4[%c0_3, %c0_4] : memref<1x128xf32, #tpu.memory_space<vmem>>, vector<1x128xf32>
    %4 = vector.broadcast %3 : vector<1x128xf32> to vector<16x128xf32>
    %5 = arith.addf %2, %4 : vector<16x128xf32>
    %c0_5 = arith.constant 0 : index
    %c0_6 = arith.constant 0 : index
    %6 = vector.load %arg5[%c0_5, %c0_6] : memref<16x128xf32, #tpu.memory_space<vmem>>, vector<16x128xf32>
    tpu.vector_store %arg5[%c0_5, %c0_6], %5 {strides = array<i32>} : memref<16x128xf32, #tpu.memory_space<vmem>>, vector<16x128xf32>,
    return
  }
  func.func @transform_0(%arg0: i32, %arg1: i32) -> (i32, i32) {
    %c0_i32 = arith.constant 0 : i32
    %c0_i32_0 = arith.constant 0 : i32
    return %arg0, %c0_i32 : i32, i32
  }
  func.func @transform_1(%arg0: i32, %arg1: i32) -> (i32, i32) {
    %c0_i32 = arith.constant 0 : i32
    %c0_i32_0 = arith.constant 0 : i32
    return %c0_i32, %arg1 : i32, i32
  }
  func.func @transform_2(%arg0: i32, %arg1: i32) -> (i32, i32) {
    %c0_i32 = arith.constant 0 : i32
    %c0_i32_0 = arith.constant 0 : i32
    return %c0_i32, %arg1 : i32, i32
  }
  func.func @transform_3(%arg0: i32, %arg1: i32) -> (i32, i32) {
    %c0_i32 = arith.constant 0 : i32
    return %arg0, %arg1 : i32, i32
  }
}

</mosaic_0001>

<bundles_post_ra>
// kernel: tpu_custom_call.1
= control target key start
LH: loop header
LB: loop body
LE: loop exit
PB: predicated region body
PF: predicated region fallthrough
CT: control target
= control target key end

     0   :  { %8 = vsyncpa [#allocation3], 0  ;;  %s260_s0 = inlined_call_operand.hbm [shape: f32[16,128], index: 0, kind: input, shape index: {}]   ;;  %s261_s1 = inlined_call_operand.hbm [shape: f32[128,128], index: 1, kind: input, shape index: {}]   ;;  %s262_s2 = inlined_call_operand.vmem [shape: f32[1,128], index: 2, kind: input, shape index: {}]   ;;  %s263_s3 = inlined_call_operand.hbm [shape: f32[16,128], index: 3, kind: output, shape index: {}]  }
   0x1   :  { %9 = vsyncpa [#allocation6], 0 }
   0x2   :  { %10 = vsyncpa [#allocation4], 0  ;;  %s15_s14 = sshll.u32 %s260_s0, 4  ;;  %s214_s15 = smov [#allocation2]   ;;  %s16_s14 = int_to_ptr.hbm [resolvable:$true] %s15_s14 }
   0x3   :  { %s17_s16 = sshll.u32 %s214_s15, 4  ;;  %s28_s19 = sshll.u32 %s261_s1, 4  ;;  %s18_s16 = int_to_ptr.vmem [resolvable:$true] %s17_s16  ;;  %s29_s19 = int_to_ptr.hbm [resolvable:$true] %s28_s19 }
   0x4   :  { %s215_s20 = smov 128   ;;  %s216_s21 = smov 8  }
   0x5   :  { %23 = dma.hbm_to_vmem [thread:$0]  %s16_s14, 256, %s18_s16, [#allocation3], %s215_s20, %s215_s20, %s216_s21  }
   0x6   :  { %s217_s22 = smov [#allocation5]  }
   0x7   :  { %s30_s23 = sshll.u32 %s217_s22, 4  ;;  %s31_s23 = int_to_ptr.vmem [resolvable:$true] %s30_s23 }
   0x8   :  { %36 = dma.hbm_to_vmem [thread:$0]  %s29_s19, 2048, %s31_s23, [#allocation6], %s215_s20, %s215_s20, %s216_s21  }
   0x9   :  { %208 = dma.done.wait [#allocation3], 256  }
   0xa   :  { %209 = vsyncadd [#allocation3], 4294967040 }
   0xb   :  { %210 = dma.done.wait [#allocation6], 2048  }
   0xc   :  { %211 = vsyncadd [#allocation6], 4294965248  ;;  %v64_v0 = vld [vmem:[#allocation5 + $0x78] sm:$0xff]  ;;  %v63_v1 = vld [vmem:[#allocation5 + $0x70] sm:$0xff]  ;;  %s218_s24 = smov [#allocation7]   ;;  %s100_s28 = sshll.u32 %s263_s3, 4  ;;  %s101_s28 = int_to_ptr.hbm [resolvable:$true] %s100_s28 }
   0xd   :  { %69 = vmatpush.msra.mxu0 %v64_v0  ;;  %114 = vmatpush.msra.mxu1 %v64_v0  ;;  %v62_v2 = vld [vmem:[#allocation5 + $0x68] sm:$0xff]  ;;  %v61_v3 = vld [vmem:[#allocation5 + $0x60] sm:$0xff]  ;;  %v60_v4 = vld [vmem:[#allocation5 + $0x58] sm:$0xff]  ;;  %s98_s25 = sshll.u32 %s218_s24, 4  ;;  %s99_s25 = int_to_ptr.vmem [resolvable:$true] %s98_s25 }
   0xe   :  { %v59_v5 = vld [vmem:[#allocation5 + $0x50] sm:$0xff]  ;;  %v58_v6 = vld [vmem:[#allocation5 + $0x48] sm:$0xff]  ;;  %v57_v7 = vld [vmem:[#allocation5 + $0x40] sm:$0xff] }
   0xf   :  { %70 = vmatpush.msra.mxu0 %v63_v1  ;;  %115 = vmatpush.msra.mxu1 %v63_v1  ;;  %v56_v8 = vld [vmem:[#allocation5 + $0x38] sm:$0xff]  ;;  %v55_v9 = vld [vmem:[#allocation5 + $0x30] sm:$0xff]  ;;  %v54_v10 = vld [vmem:[#allocation5 + $0x28] sm:$0xff] }
  0x10   :  { %v53_v11 = vld [vmem:[#allocation5 + $0x20] sm:$0xff]  ;;  %v52_v12 = vld [vmem:[#allocation5 + $0x18] sm:$0xff]  ;;  %v51_v13 = vld [vmem:[#allocation5 + $0x10] sm:$0xff] }
  0x11   :  { %71 = vmatpush.msra.mxu0 %v62_v2  ;;  %116 = vmatpush.msra.mxu1 %v62_v2  ;;  %v50_v14 = vld [vmem:[#allocation5 + $0x8] sm:$0xff]  ;;  %v49_v15 = vld [vmem:[#allocation5] sm:$0xff]  ;;  %v47_v16 = vld [vmem:[#allocation2] sm:$0xff] }
  0x12   :  { %v48_v17 = vld [vmem:[#allocation2 + $0x8] sm:$0xff]  ;;  %v135_v18 = vld [vmem:[%s262_s2] ss:$0 sm:$0xff] }
  0x13   :  { %72 = vmatpush.msra.mxu0 %v61_v3  ;;  %117 = vmatpush.msra.mxu1 %v61_v3 }
  0x15   :  { %73 = vmatpush.msra.mxu0 %v60_v4  ;;  %118 = vmatpush.msra.mxu1 %v60_v4 }
  0x17   :  { %74 = vmatpush.msra.mxu0 %v59_v5  ;;  %119 = vmatpush.msra.mxu1 %v59_v5 }
  0x19   :  { %75 = vmatpush.msra.mxu0 %v58_v6  ;;  %120 = vmatpush.msra.mxu1 %v58_v6 }
  0x1b   :  { %76 = vmatpush.msra.mxu0 %v57_v7  ;;  %121 = vmatpush.msra.mxu1 %v57_v7 }
  0x1d   :  { %77 = vmatpush.msra.mxu0 %v56_v8  ;;  %122 = vmatpush.msra.mxu1 %v56_v8 }
  0x1f   :  { %78 = vmatpush.msra.mxu0 %v55_v9  ;;  %123 = vmatpush.msra.mxu1 %v55_v9 }
  0x21   :  { %79 = vmatpush.msra.mxu0 %v54_v10  ;;  %124 = vmatpush.msra.mxu1 %v54_v10 }
  0x23   :  { %80 = vmatpush.msra.mxu0 %v53_v11  ;;  %125 = vmatpush.msra.mxu1 %v53_v11 }
  0x25   :  { %81 = vmatpush.msra.mxu0 %v52_v12  ;;  %126 = vmatpush.msra.mxu1 %v52_v12 }
  0x27   :  { %82 = vmatpush.msra.mxu0 %v51_v13  ;;  %127 = vmatpush.msra.mxu1 %v51_v13 }
  0x29   :  { %83 = vmatpush.msra.mxu0 %v50_v14  ;;  %128 = vmatpush.msra.mxu1 %v50_v14 }
  0x2b   :  { %84 = vmatpush.msra.mxu0 %v49_v15  ;;  %129 = vmatpush.msra.mxu1 %v49_v15 }
  0x2c   :  { %85 = vmatmul.f32.vlgmr.msra.gmra.mxu0 %v47_v16  ;;  %88 = vmatmul.f32.vlgmr.msra.gmra.mxu1 %v48_v17 }
  0xa9   :  { %v86_v19 = vpop.f32.mrf.mxu0  ;;  %v89_v20 = vpop.f32.mrf.mxu1 }
  0xaa   :  { %v87_v21 = vadd.f32 %v135_v18, %v86_v19  ;;  %v90_v22 = vadd.f32 %v135_v18, %v89_v20 }
  0xac   :  { %92 = vst [vmem:[#allocation7] sm:$0xff] %v87_v21 }
  0xad   :  { %93 = vst [vmem:[#allocation7 + $0x8] sm:$0xff] %v90_v22 }
  0xae   :  { %106 = dma.vmem_to_hbm [thread:$0]  %s99_s25, 256, %s101_s28, [#allocation4], %s215_s20, %s215_s20, %s216_s21  }
  0xaf   :  { %212 = dma.done.wait [#allocation4], 256  }
  0xb0   :  { %213 = vsyncadd [#allocation4], 4294967040 }
  0xb1   :  { %111 = vsyncpa [#allocation3], 1 }
  0xb2   :  { %112 = vsyncpa [#allocation6], 1 }
  0xb3   :  { %113 = vsyncpa [#allocation4], 1 }

</bundles_post_ra>
